<compile_context>
chip_gen: v5e
topology: v5e:2x2
jax: 0.10.0
libtpu: 0.0.40
codegen_flags: <defaults>
</compile_context>

<pallas_src>
import functools

import jax
import jax.numpy as jnp
from jax import lax
from jax.experimental import pallas as pl
from jax.experimental.pallas import tpu as pltpu


def _vmem_limit_bytes():
    """Per-generation scoped-VMEM request: ~75% of physical capacity."""
    try:
        cap = int(pltpu.get_tpu_info().vmem_capacity_bytes)
    except Exception:  # query unavailable -> conservative (v7x-safe) default
        cap = 64 * 1024 * 1024
    return int(max(32 * 1024 * 1024, min(cap * 3 // 4, 112 * 1024 * 1024)))


def _pick_h_tile(ho, cout, wp, wo, vmem_budget):
    """Largest row-tile TH (divisor of Ho, multiple of 8 or == Ho) whose
    double-buffered in+out kernel-2 blocks fit within a slice of the budget."""
    cands = sorted({d for d in range(8, ho + 1, 8) if ho % d == 0} | {ho})

    def blk_bytes(th):
        return 2 * 4 * cout * th * (wp + wo)          # 2x double-buffer, f32

    fitting = [t for t in cands if blk_bytes(t) <= max(vmem_budget // 4, 1 << 20)]
    return max(fitting) if fitting else cands[0]


def cbr_forward(x_nchw, w_hwio, gamma, beta, alpha, *, stride=1, eps=1e-3):
    """CBR forward. x_nchw: (N, Cin, H, W); w_hwio: (K, K, Cin, Cout). Returns NCHW."""
    N, Cin, H, W = x_nchw.shape
    K = w_hwio.shape[0]
    Cout = w_hwio.shape[-1]
    pad = (K - 1) // 2
    Hp, Wp = H + 2 * pad, W + 2 * pad
    Ho = (Hp - K) // stride + 1
    Wo = (Wp - K) // stride + 1
    KKC = K * K * Cin
    F = Ho * Wp                       # width-padded flattened output extent
    vmem_limit = _vmem_limit_bytes()

    # ---- wrapper glue (layout only, cheap) ----
    # Zero-pad spatially; `stride` extra bottom rows give slack so every tap
    # is an in-bounds contiguous (lane-stride = stride) slice of the flat image.
    xp = jnp.pad(x_nchw.astype(jnp.float32),
                 ((0, 0), (0, 0), (pad, pad + stride), (pad, pad)))
    Lflat = (Hp + stride) * Wp
    x_flat = xp.reshape(N, Cin, Lflat)                    # free row-major reshape

    # (Cout, K*K*Cin) weight, tap-major / channel-minor to match scratch rows.
    w2 = w_hwio.astype(jnp.float32).reshape(KKC, Cout).T

    # Valid-column mask over the width-padded flat output (1 = real pixel).
    col = jnp.arange(F, dtype=jnp.int32) % Wp
    mask = (col < Wo).astype(jnp.float32).reshape(1, F)

    # ---------------- kernel 1: packed conv + per-N BN-stat partials ----------------
    def conv_stats_kernel(x_ref, w_ref, m_ref, y_ref, s1_ref, s2_ref, x2_ref):
        xv = x_ref[0]                                     # (Cin, Lflat)
        # im2col into VMEM scratch: rows [t*Cin, (t+1)*Cin) hold tap t=(kh,kw).
        for kh in range(K):
            for kw in range(K):
                t = kh * K + kw
                start = kh * Wp + kw
                if stride == 1:
                    tap = xv[:, start:start + F]
                else:
                    tap = xv[:, start:start + stride * F:stride]
                x2_ref[t * Cin:(t + 1) * Cin, :] = tap
        # One packed-contraction matmul: (Cout, K*K*Cin) @ (K*K*Cin, F).
        z = jnp.dot(w_ref[...], x2_ref[...],
                    preferred_element_type=jnp.float32)   # (Cout, F)
        y_ref[0] = z                                      # channels on sublanes
        zm = z * m_ref[...]                               # zero width-pad columns
        s1_ref[0] = jnp.sum(zm, axis=1, keepdims=True)    # (Cout, 1) partial sums
        s2_ref[0] = jnp.sum(zm * z, axis=1, keepdims=True)

    y_flat, s1, s2 = pl.pallas_call(
        conv_stats_kernel,
        out_shape=(jax.ShapeDtypeStruct((N, Cout, F), jnp.float32),
                   jax.ShapeDtypeStruct((N, Cout, 1), jnp.float32),
                   jax.ShapeDtypeStruct((N, Cout, 1), jnp.float32)),
        grid=(N,),
        in_specs=[pl.BlockSpec((1, Cin, Lflat), lambda n: (n, 0, 0)),
                  pl.BlockSpec((Cout, KKC), lambda n: (0, 0)),
                  pl.BlockSpec((1, F), lambda n: (0, 0))],
        out_specs=(pl.BlockSpec((1, Cout, F), lambda n: (n, 0, 0)),
                   pl.BlockSpec((1, Cout, 1), lambda n: (n, 0, 0)),
                   pl.BlockSpec((1, Cout, 1), lambda n: (n, 0, 0))),
        scratch_shapes=[pltpu.VMEM((KKC, F), jnp.float32)],
        compiler_params=pltpu.CompilerParams(
            dimension_semantics=("parallel",),            # per-N partials: no carry
            vmem_limit_bytes=vmem_limit),
    )(x_flat, w2, mask)

    # ---- per-channel BN fold: tiny (Cout,1) math, once, in plain JAX ----
    cnt = float(N * Ho * Wo)
    s1t = jnp.sum(s1, axis=0)                             # (Cout, 1)
    s2t = jnp.sum(s2, axis=0)
    mean = s1t / cnt
    var = jnp.maximum(s2t / cnt - mean * mean, 0.0)       # biased var (training BN)
    inv = lax.rsqrt(var + eps)
    g = gamma.astype(jnp.float32).reshape(Cout, 1)
    b = beta.astype(jnp.float32).reshape(Cout, 1)
    a = alpha.astype(jnp.float32).reshape(Cout, 1)
    scale = g * inv
    shift = b - mean * scale
    # Broadcast along width once so kernel 2 only needs a sublane broadcast.
    scale_b = jnp.broadcast_to(scale.reshape(Cout, 1, 1), (Cout, 1, Wo))
    shift_b = jnp.broadcast_to(shift.reshape(Cout, 1, 1), (Cout, 1, Wo))
    alpha_b = jnp.broadcast_to(a.reshape(Cout, 1, 1), (Cout, 1, Wo))

    # ---------------- kernel 2: tiled normalize + PReLU -> final NCHW ----------------
    y4 = y_flat.reshape(N, Cout, Ho, Wp)                  # free (bitcast) reshape
    TH = _pick_h_tile(Ho, Cout, Wp, Wo, vmem_limit)

    def bn_prelu_kernel(y_ref, sc_ref, sh_ref, a_ref, o_ref):
        yv = y_ref[0][:, :, :Wo]                          # (Cout, TH, Wo): drop W pad
        out = yv * sc_ref[...] + sh_ref[...]              # per-channel FMA
        o_ref[0] = jnp.where(out >= 0, out, out * a_ref[...])

    out = pl.pallas_call(
        bn_prelu_kernel,
        out_shape=jax.ShapeDtypeStruct((N, Cout, Ho, Wo), jnp.float32),
        grid=(N, Ho // TH),
        in_specs=[pl.BlockSpec((1, Cout, TH, Wp), lambda n, h: (n, 0, h, 0)),
                  pl.BlockSpec((Cout, 1, Wo), lambda n, h: (0, 0, 0)),
                  pl.BlockSpec((Cout, 1, Wo), lambda n, h: (0, 0, 0)),
                  pl.BlockSpec((Cout, 1, Wo), lambda n, h: (0, 0, 0))],
        out_specs=pl.BlockSpec((1, Cout, TH, Wo), lambda n, h: (n, 0, h, 0)),
        compiler_params=pltpu.CompilerParams(
            dimension_semantics=("parallel", "parallel"),
            vmem_limit_bytes=vmem_limit),
    )(y4, scale_b, shift_b, alpha_b)

    return out                                            # already NCHW (N,Cout,H',W')


# ---------------- pure-JAX reference (for correctness check) ----------------
def cbr_reference(x_nchw, w_hwio, gamma, beta, alpha, *, stride=1, eps=1e-3):
    K = w_hwio.shape[0]
    pad = (K - 1) // 2
    y = lax.conv_general_dilated(
        x_nchw.astype(jnp.float32), w_hwio.astype(jnp.float32),
        window_strides=(stride, stride), padding=((pad, pad), (pad, pad)),
        dimension_numbers=("NCHW", "HWIO", "NCHW"))
    mean = jnp.mean(y, axis=(0, 2, 3), keepdims=True)
    var = jnp.mean((y - mean) ** 2, axis=(0, 2, 3), keepdims=True)
    yhat = (y - mean) * lax.rsqrt(var + eps)
    out = yhat * gamma.reshape(1, -1, 1, 1) + beta.reshape(1, -1, 1, 1)
    return jnp.where(out >= 0, out, out * alpha.reshape(1, -1, 1, 1))


if __name__ == "__main__":
    # CBR(nIn=4, nOut=8, kSize=3, stride=1)
    N, Cin, Cout, H, W, K, stride = 2, 4, 8, 16, 16, 3, 1

    key = jax.random.PRNGKey(0)
    kx, kw, kg, kb = jax.random.split(key, 4)
    x = jax.random.normal(kx, (N, Cin, H, W), dtype=jnp.float32)          # NCHW input
    w_hwio = 0.1 * jax.random.normal(kw, (K, K, Cin, Cout), dtype=jnp.float32)
    gamma = 1.0 + 0.1 * jax.random.normal(kg, (Cout,), dtype=jnp.float32)  # BN weight
    beta = 0.1 * jax.random.normal(kb, (Cout,), dtype=jnp.float32)         # BN bias
    alpha = 0.25 * jnp.ones((Cout,), jnp.float32)                          # PReLU default

    fwd = jax.jit(functools.partial(cbr_forward, stride=stride, eps=1e-3))
    out = jax.block_until_ready(fwd(x, w_hwio, gamma, beta, alpha))

    ref = cbr_reference(x, w_hwio, gamma, beta, alpha, stride=stride, eps=1e-3)
    assert out.shape == (N, Cout, H, W), out.shape
    err = float(jnp.max(jnp.abs(out - ref)))
    assert jnp.allclose(out, ref, atol=1e-4, rtol=1e-4), err

    print("KERNEL_OK")
</pallas_src>

<mosaic_0001>
module attributes {stable_mosaic.version = 11 : i64} {
  func.func @conv_stats_kernel(%arg0: i32, %arg1: memref<1x4x342xf32, #tpu.memory_space<vmem>>, %arg2: memref<8x36xf32, #tpu.memory_space<vmem>>, %arg3: memref<1x288xf32, #tpu.memory_space<vmem>>, %arg4: memref<1x8x288xf32, #tpu.memory_space<vmem>>, %arg5: memref<1x8x1xf32, #tpu.memory_space<vmem>>, %arg6: memref<1x8x1xf32, #tpu.memory_space<vmem>>, %arg7: memref<36x288xf32, #tpu.memory_space<vmem>>) attributes {dimension_semantics = [#tpu.dimension_semantics<parallel>], iteration_bounds = array<i64: 2>, scalar_prefetch = 0 : i64, scratch_operands = 1 : i64, tpu.core_type = #tpu.core_type<tc>, window_params = [{transform_indices = @transform_0, window_bounds = array<i64: 1, 4, 342>}, {pipeline_mode = #tpu.pipeline_mode<synchronous>, transform_indices = @transform_1, window_bounds = array<i64: 8, 36>}, {pipeline_mode = #tpu.pipeline_mode<synchronous>, transform_indices = @transform_2, window_bounds = array<i64: 1, 288>}, {transform_indices = @transform_3, window_bounds = array<i64: 1, 8, 288>}, {transform_indices = @transform_4, window_bounds = array<i64: 1, 8, 1>}, {transform_indices = @transform_5, window_bounds = array<i64: 1, 8, 1>}]} {
    %c0 = arith.constant 0 : index
    %c0_0 = arith.constant 0 : index
    %c0_1 = arith.constant 0 : index
    %0 = vector.load %arg1[%c0, %c0_0, %c0_1] : memref<1x4x342xf32, #tpu.memory_space<vmem>>, vector<1x4x342xf32>
    %1 = vector.shape_cast %0 : vector<1x4x342xf32> to vector<4x342xf32>
    %2 = vector.extract_strided_slice %1 {offsets = [0, 0], sizes = [4, 288], strides = [1, 1]} : vector<4x342xf32> to vector<4x288xf32>
    %c0_2 = arith.constant 0 : index
    %c0_3 = arith.constant 0 : index
    %3 = vector.load %arg7[%c0_2, %c0_3] : memref<36x288xf32, #tpu.memory_space<vmem>>, vector<4x288xf32>
    tpu.vector_store %arg7[%c0_2, %c0_3], %2 {strides = array<i32>} : memref<36x288xf32, #tpu.memory_space<vmem>>, vector<4x288xf32>,
    %4 = vector.extract_strided_slice %1 {offsets = [0, 1], sizes = [4, 288], strides = [1, 1]} : vector<4x342xf32> to vector<4x288xf32>
    %c4 = arith.constant 4 : index
    %c0_4 = arith.constant 0 : index
    %5 = vector.load %arg7[%c4, %c0_4] : memref<36x288xf32, #tpu.memory_space<vmem>>, vector<4x288xf32>
    tpu.vector_store %arg7[%c4, %c0_4], %4 {strides = array<i32>} : memref<36x288xf32, #tpu.memory_space<vmem>>, vector<4x288xf32>,
    %6 = vector.extract_strided_slice %1 {offsets = [0, 2], sizes = [4, 288], strides = [1, 1]} : vector<4x342xf32> to vector<4x288xf32>
    %c8 = arith.constant 8 : index
    %c0_5 = arith.constant 0 : index
    %7 = vector.load %arg7[%c8, %c0_5] : memref<36x288xf32, #tpu.memory_space<vmem>>, vector<4x288xf32>
    tpu.vector_store %arg7[%c8, %c0_5], %6 {strides = array<i32>} : memref<36x288xf32, #tpu.memory_space<vmem>>, vector<4x288xf32>,
    %8 = vector.extract_strided_slice %1 {offsets = [0, 18], sizes = [4, 288], strides = [1, 1]} : vector<4x342xf32> to vector<4x288xf32>
    %c12 = arith.constant 12 : index
    %c0_6 = arith.constant 0 : index
    %9 = vector.load %arg7[%c12, %c0_6] : memref<36x288xf32, #tpu.memory_space<vmem>>, vector<4x288xf32>
    tpu.vector_store %arg7[%c12, %c0_6], %8 {strides = array<i32>} : memref<36x288xf32, #tpu.memory_space<vmem>>, vector<4x288xf32>,
    %10 = vector.extract_strided_slice %1 {offsets = [0, 19], sizes = [4, 288], strides = [1, 1]} : vector<4x342xf32> to vector<4x288xf32>
    %c16 = arith.constant 16 : index
    %c0_7 = arith.constant 0 : index
    %11 = vector.load %arg7[%c16, %c0_7] : memref<36x288xf32, #tpu.memory_space<vmem>>, vector<4x288xf32>
    tpu.vector_store %arg7[%c16, %c0_7], %10 {strides = array<i32>} : memref<36x288xf32, #tpu.memory_space<vmem>>, vector<4x288xf32>,
    %12 = vector.extract_strided_slice %1 {offsets = [0, 20], sizes = [4, 288], strides = [1, 1]} : vector<4x342xf32> to vector<4x288xf32>
    %c20 = arith.constant 20 : index
    %c0_8 = arith.constant 0 : index
    %13 = vector.load %arg7[%c20, %c0_8] : memref<36x288xf32, #tpu.memory_space<vmem>>, vector<4x288xf32>
    tpu.vector_store %arg7[%c20, %c0_8], %12 {strides = array<i32>} : memref<36x288xf32, #tpu.memory_space<vmem>>, vector<4x288xf32>,
    %14 = vector.extract_strided_slice %1 {offsets = [0, 36], sizes = [4, 288], strides = [1, 1]} : vector<4x342xf32> to vector<4x288xf32>
    %c24 = arith.constant 24 : index
    %c0_9 = arith.constant 0 : index
    %15 = vector.load %arg7[%c24, %c0_9] : memref<36x288xf32, #tpu.memory_space<vmem>>, vector<4x288xf32>
    tpu.vector_store %arg7[%c24, %c0_9], %14 {strides = array<i32>} : memref<36x288xf32, #tpu.memory_space<vmem>>, vector<4x288xf32>,
    %16 = vector.extract_strided_slice %1 {offsets = [0, 37], sizes = [4, 288], strides = [1, 1]} : vector<4x342xf32> to vector<4x288xf32>
    %c28 = arith.constant 28 : index
    %c0_10 = arith.constant 0 : index
    %17 = vector.load %arg7[%c28, %c0_10] : memref<36x288xf32, #tpu.memory_space<vmem>>, vector<4x288xf32>
    tpu.vector_store %arg7[%c28, %c0_10], %16 {strides = array<i32>} : memref<36x288xf32, #tpu.memory_space<vmem>>, vector<4x288xf32>,
    %18 = vector.extract_strided_slice %1 {offsets = [0, 38], sizes = [4, 288], strides = [1, 1]} : vector<4x342xf32> to vector<4x288xf32>
    %c32 = arith.constant 32 : index
    %c0_11 = arith.constant 0 : index
    %19 = vector.load %arg7[%c32, %c0_11] : memref<36x288xf32, #tpu.memory_space<vmem>>, vector<4x288xf32>
    tpu.vector_store %arg7[%c32, %c0_11], %18 {strides = array<i32>} : memref<36x288xf32, #tpu.memory_space<vmem>>, vector<4x288xf32>,
    %c0_12 = arith.constant 0 : index
    %c0_13 = arith.constant 0 : index
    %20 = vector.load %arg2[%c0_12, %c0_13] : memref<8x36xf32, #tpu.memory_space<vmem>>, vector<8x36xf32>
    %c0_14 = arith.constant 0 : index
    %c0_15 = arith.constant 0 : index
    %21 = vector.load %arg7[%c0_14, %c0_15] : memref<36x288xf32, #tpu.memory_space<vmem>>, vector<36x288xf32>
    %cst = arith.constant dense<0.000000e+00> : vector<8x288xf32>
    %22 = tpu.matmul %20, %21, %cst {dimension_numbers = #tpu.dot_dimension_numbers<[1], [0], [0], [1], [0, 0, 1, 1], [], []>} : vector<8x36xf32>, vector<36x288xf32>, vector<8x288xf32> -> vector<8x288xf32>
    %c0_16 = arith.constant 0 : index
    %c0_17 = arith.constant 0 : index
    %c0_18 = arith.constant 0 : index
    %23 = vector.load %arg4[%c0_16, %c0_17, %c0_18] : memref<1x8x288xf32, #tpu.memory_space<vmem>>, vector<1x8x288xf32>
    %24 = vector.shape_cast %23 : vector<1x8x288xf32> to vector<8x288xf32>
    %25 = vector.shape_cast %22 : vector<8x288xf32> to vector<1x8x288xf32>
    tpu.vector_store %arg4[%c0_16, %c0_17, %c0_18], %25 {strides = array<i32>} : memref<1x8x288xf32, #tpu.memory_space<vmem>>, vector<1x8x288xf32>,
    %c0_19 = arith.constant 0 : index
    %c0_20 = arith.constant 0 : index
    %26 = vector.load %arg3[%c0_19, %c0_20] : memref<1x288xf32, #tpu.memory_space<vmem>>, vector<1x288xf32>
    %27 = vector.broadcast %26 : vector<1x288xf32> to vector<8x288xf32>
    %28 = arith.mulf %22, %27 : vector<8x288xf32>
    %cst_21 = arith.constant dense<0.000000e+00> : vector<8xf32>
    %29 = vector.multi_reduction <add>, %28, %cst_21 [1] : vector<8x288xf32> to vector<8xf32>
    %30 = vector.shape_cast %29 : vector<8xf32> to vector<8x1xf32>
    %c0_22 = arith.constant 0 : index
    %c0_23 = arith.constant 0 : index
    %c0_24 = arith.constant 0 : index
    %31 = vector.load %arg5[%c0_22, %c0_23, %c0_24] : memref<1x8x1xf32, #tpu.memory_space<vmem>>, vector<1x8x1xf32>
    %32 = vector.shape_cast %31 : vector<1x8x1xf32> to vector<8x1xf32>
    %33 = vector.shape_cast %30 : vector<8x1xf32> to vector<1x8x1xf32>
    tpu.vector_store %arg5[%c0_22, %c0_23, %c0_24], %33 {strides = array<i32>} : memref<1x8x1xf32, #tpu.memory_space<vmem>>, vector<1x8x1xf32>,
    %34 = arith.mulf %28, %22 : vector<8x288xf32>
    %cst_25 = arith.constant dense<0.000000e+00> : vector<8xf32>
    %35 = vector.multi_reduction <add>, %34, %cst_25 [1] : vector<8x288xf32> to vector<8xf32>
    %36 = vector.shape_cast %35 : vector<8xf32> to vector<8x1xf32>
    %c0_26 = arith.constant 0 : index
    %c0_27 = arith.constant 0 : index
    %c0_28 = arith.constant 0 : index
    %37 = vector.load %arg6[%c0_26, %c0_27, %c0_28] : memref<1x8x1xf32, #tpu.memory_space<vmem>>, vector<1x8x1xf32>
    %38 = vector.shape_cast %37 : vector<1x8x1xf32> to vector<8x1xf32>
    %39 = vector.shape_cast %36 : vector<8x1xf32> to vector<1x8x1xf32>
    tpu.vector_store %arg6[%c0_26, %c0_27, %c0_28], %39 {strides = array<i32>} : memref<1x8x1xf32, #tpu.memory_space<vmem>>, vector<1x8x1xf32>,
    return
  }
  func.func @transform_0(%arg0: i32) -> (i32, i32, i32) {
    %c0_i32 = arith.constant 0 : i32
    %c0_i32_0 = arith.constant 0 : i32
    %c0_i32_1 = arith.constant 0 : i32
    return %arg0, %c0_i32, %c0_i32_0 : i32, i32, i32
  }
  func.func @transform_1(%arg0: i32) -> (i32, i32) {
    %c0_i32 = arith.constant 0 : i32
    %c0_i32_0 = arith.constant 0 : i32
    %c0_i32_1 = arith.constant 0 : i32
    return %c0_i32, %c0_i32_0 : i32, i32
  }
  func.func @transform_2(%arg0: i32) -> (i32, i32) {
    %c0_i32 = arith.constant 0 : i32
    %c0_i32_0 = arith.constant 0 : i32
    %c0_i32_1 = arith.constant 0 : i32
    return %c0_i32, %c0_i32_0 : i32, i32
  }
  func.func @transform_3(%arg0: i32) -> (i32, i32, i32) {
    %c0_i32 = arith.constant 0 : i32
    %c0_i32_0 = arith.constant 0 : i32
    %c0_i32_1 = arith.constant 0 : i32
    return %arg0, %c0_i32, %c0_i32_0 : i32, i32, i32
  }
  func.func @transform_4(%arg0: i32) -> (i32, i32, i32) {
    %c0_i32 = arith.constant 0 : i32
    %c0_i32_0 = arith.constant 0 : i32
    %c0_i32_1 = arith.constant 0 : i32
    return %arg0, %c0_i32, %c0_i32_0 : i32, i32, i32
  }
  func.func @transform_5(%arg0: i32) -> (i32, i32, i32) {
    %c0_i32 = arith.constant 0 : i32
    %c0_i32_0 = arith.constant 0 : i32
    %c0_i32_1 = arith.constant 0 : i32
    return %arg0, %c0_i32, %c0_i32_0 : i32, i32, i32
  }
}

module attributes {stable_mosaic.version = 11 : i64} {
  func.func @bn_prelu_kernel(%arg0: i32, %arg1: i32, %arg2: memref<1x8x16x18xf32, #tpu.memory_space<vmem>>, %arg3: memref<8x1x16xf32, #tpu.memory_space<vmem>>, %arg4: memref<8x1x16xf32, #tpu.memory_space<vmem>>, %arg5: memref<8x1x16xf32, #tpu.memory_space<vmem>>, %arg6: memref<1x8x16x16xf32, #tpu.memory_space<vmem>>) attributes {dimension_semantics = [#tpu.dimension_semantics<parallel>, #tpu.dimension_semantics<parallel>], iteration_bounds = array<i64: 2, 1>, scalar_prefetch = 0 : i64, scratch_operands = 0 : i64, tpu.core_type = #tpu.core_type<tc>, window_params = [{transform_indices = @transform_0, window_bounds = array<i64: 1, 8, 16, 18>}, {pipeline_mode = #tpu.pipeline_mode<synchronous>, transform_indices = @transform_1, window_bounds = array<i64: 8, 1, 16>}, {pipeline_mode = #tpu.pipeline_mode<synchronous>, transform_indices = @transform_2, window_bounds = array<i64: 8, 1, 16>}, {pipeline_mode = #tpu.pipeline_mode<synchronous>, transform_indices = @transform_3, window_bounds = array<i64: 8, 1, 16>}, {transform_indices = @transform_4, window_bounds = array<i64: 1, 8, 16, 16>}]} {
    %c0 = arith.constant 0 : index
    %c0_0 = arith.constant 0 : index
    %c0_1 = arith.constant 0 : index
    %c0_2 = arith.constant 0 : index
    %0 = vector.load %arg2[%c0, %c0_0, %c0_1, %c0_2] : memref<1x8x16x18xf32, #tpu.memory_space<vmem>>, vector<1x8x16x18xf32>
    %1 = vector.shape_cast %0 : vector<1x8x16x18xf32> to vector<8x16x18xf32>
    %2 = vector.extract_strided_slice %1 {offsets = [0, 0, 0], sizes = [8, 16, 16], strides = [1, 1, 1]} : vector<8x16x18xf32> to vector<8x16x16xf32>
    %c0_3 = arith.constant 0 : index
    %c0_4 = arith.constant 0 : index
    %c0_5 = arith.constant 0 : index
    %3 = vector.load %arg3[%c0_3, %c0_4, %c0_5] : memref<8x1x16xf32, #tpu.memory_space<vmem>>, vector<8x1x16xf32>
    %4 = vector.broadcast %3 : vector<8x1x16xf32> to vector<8x16x16xf32>
    %5 = arith.mulf %2, %4 : vector<8x16x16xf32>
    %c0_6 = arith.constant 0 : index
    %c0_7 = arith.constant 0 : index
    %c0_8 = arith.constant 0 : index
    %6 = vector.load %arg4[%c0_6, %c0_7, %c0_8] : memref<8x1x16xf32, #tpu.memory_space<vmem>>, vector<8x1x16xf32>
    %7 = vector.broadcast %6 : vector<8x1x16xf32> to vector<8x16x16xf32>
    %8 = arith.addf %5, %7 : vector<8x16x16xf32>
    %cst = arith.constant 0.000000e+00 : f32
    %9 = vector.broadcast %cst : f32 to vector<8x16x16xf32>
    %10 = arith.cmpf oge, %8, %9 : vector<8x16x16xf32>
    %c0_9 = arith.constant 0 : index
    %c0_10 = arith.constant 0 : index
    %c0_11 = arith.constant 0 : index
    %11 = vector.load %arg5[%c0_9, %c0_10, %c0_11] : memref<8x1x16xf32, #tpu.memory_space<vmem>>, vector<8x1x16xf32>
    %12 = vector.broadcast %11 : vector<8x1x16xf32> to vector<8x16x16xf32>
    %13 = arith.mulf %8, %12 : vector<8x16x16xf32>
    %14 = arith.select %10, %8, %13 : vector<8x16x16xi1>, vector<8x16x16xf32>
    %c0_12 = arith.constant 0 : index
    %c0_13 = arith.constant 0 : index
    %c0_14 = arith.constant 0 : index
    %c0_15 = arith.constant 0 : index
    %15 = vector.load %arg6[%c0_12, %c0_13, %c0_14, %c0_15] : memref<1x8x16x16xf32, #tpu.memory_space<vmem>>, vector<1x8x16x16xf32>
    %16 = vector.shape_cast %15 : vector<1x8x16x16xf32> to vector<8x16x16xf32>
    %17 = vector.shape_cast %14 : vector<8x16x16xf32> to vector<1x8x16x16xf32>
    tpu.vector_store %arg6[%c0_12, %c0_13, %c0_14, %c0_15], %17 {strides = array<i32>} : memref<1x8x16x16xf32, #tpu.memory_space<vmem>>, vector<1x8x16x16xf32>,
    return
  }
  func.func @transform_0(%arg0: i32, %arg1: i32) -> (i32, i32, i32, i32) {
    %c0_i32 = arith.constant 0 : i32
    %c0_i32_0 = arith.constant 0 : i32
    %c0_i32_1 = arith.constant 0 : i32
    return %arg0, %c0_i32, %arg1, %c0_i32_0 : i32, i32, i32, i32
  }
  func.func @transform_1(%arg0: i32, %arg1: i32) -> (i32, i32, i32) {
    %c0_i32 = arith.constant 0 : i32
    %c0_i32_0 = arith.constant 0 : i32
    %c0_i32_1 = arith.constant 0 : i32
    %c0_i32_2 = arith.constant 0 : i32
    return %c0_i32, %c0_i32_0, %c0_i32_1 : i32, i32, i32
  }
  func.func @transform_2(%arg0: i32, %arg1: i32) -> (i32, i32, i32) {
    %c0_i32 = arith.constant 0 : i32
    %c0_i32_0 = arith.constant 0 : i32
    %c0_i32_1 = arith.constant 0 : i32
    %c0_i32_2 = arith.constant 0 : i32
    return %c0_i32, %c0_i32_0, %c0_i32_1 : i32, i32, i32
  }
  func.func @transform_3(%arg0: i32, %arg1: i32) -> (i32, i32, i32) {
    %c0_i32 = arith.constant 0 : i32
    %c0_i32_0 = arith.constant 0 : i32
    %c0_i32_1 = arith.constant 0 : i32
    %c0_i32_2 = arith.constant 0 : i32
    return %c0_i32, %c0_i32_0, %c0_i32_1 : i32, i32, i32
  }
  func.func @transform_4(%arg0: i32, %arg1: i32) -> (i32, i32, i32, i32) {
    %c0_i32 = arith.constant 0 : i32
    %c0_i32_0 = arith.constant 0 : i32
    %c0_i32_1 = arith.constant 0 : i32
    return %arg0, %c0_i32, %arg1, %c0_i32_0 : i32, i32, i32, i32
  }
}

</mosaic_0001>

<bundles_post_ra>
// kernel: cbr_forward.2
= control target key start
LH: loop header
LB: loop body
LE: loop exit
PB: predicated region body
PF: predicated region fallthrough
CT: control target
= control target key end

     0   :  { %s755_s18 = smov 0   ;;  %s841_s0 = inlined_call_operand.vmem [shape: f32[2,4,342], index: 0, kind: input, shape index: {}]   ;;  %s842_s1 = inlined_call_operand.vmem [shape: f32[8,36], index: 1, kind: input, shape index: {}]   ;;  %s843_s2 = inlined_call_operand.vmem [shape: f32[1,288], index: 2, kind: input, shape index: {}]   ;;  %s844_s3 = inlined_call_operand.vmem [shape: f32[2,8,288], index: 3, kind: output, shape index: {0}]   ;;  %s845_s4 = inlined_call_operand.vmem [shape: f32[2,8,1], index: 4, kind: output, shape index: {1}]   ;;  %s846_s5 = inlined_call_operand.vmem [shape: f32[2,8,1], index: 5, kind: output, shape index: {2}]  }
   0x1 LB: > { %s674_s19 = sadd.s32 4294967295, %s715_s18   ;;  %p678_p0 = scmp.ge.s32.totalorder %s715_s18, 1  ;;  %s715_s18 = sphi %s755_s18, %s16_s18  }
   0x2   : > { %p192_p1 = scmp.lt.s32.totalorder %s715_s18, 3 }
   0x4   : > { %p193_p2 = pnand %p678_p0, %p192_p1 }
   0x5   : > { %p228_p3 = scmp.lt.s32.totalorder (!%p193_p2), %s674_s19, 1  ;;  %s717_s24 = smov (!%p193_p2), 127  }
   0x6   : > { %196 = sbr.rel (%p193_p2) target bundleno = 491 (0x1eb), region = 32  ;;  %s718_s25 = smov (!%p193_p2), 126  }
   0x7   : > { %s719_s26 = smov (!%p193_p2), 110   ;;  %s720_s27 = smov (!%p193_p2), 109  }
   0x8   : > { %s721_s28 = smov (!%p193_p2), 108   ;;  %s722_s29 = smov (!%p193_p2), 92  }
   0x9   : > { %s723_s30 = smov (!%p193_p2), 91   ;;  %s724_s6 = smov (!%p193_p2), 90  }
   0xb   : > { %s848_s19 = smov (!%p228_p3, %s674_s19), 1  ;;  %vm261_vm0 = vcmask 257024   ;;  %vm284_vm1 = vcmask 261124   ;;  %vm363_vm2 = vcmask 883712   ;;  %vm341_vm3 = vcmask 891904  }
   0xc   : > { %s691_s20 = smul.u32 12, %s848_s19  ;;  %vm384_vm4 = vcmask 752640   ;;  %vm276_vm5 = vcmask 1039360   ;;  %vm406_vm6 = vcmask 744448   ;;  %vm298_vm7 = vcmask 1031168   ;;  %s681_s15 = sshll.u32 %s848_s19, 3 }
   0xd   : > { %vm427_vm8 = vcmask 736256   ;;  %vm456_vm9 = vcmask 1043456   ;;  %vm320_vm10 = vcmask 900096   ;;  %vm452_vm11 = vcmask 293888   ;;  %s692_s9 = smul.u32 24, %s848_s19 }
   0xe   : > { %s232_s23 = scalar_lea.vmem %s841_s0, %s691_s20  ;;  %vm528_vm12 = vcmask 261120   ;;  %s241_s20 = scalar_lea.vmem %s845_s4, %s681_s15  ;;  %vm546_vm13 = vcmask 7168  }
   0xf   : > { %v247_v0 = vld [vmem:[%s232_s23 + $0x8] sm:$0xf]  ;;  %v769_v1 = vld [vmem:[%s232_s23] sm:$0xff]  ;;  %s237_s14 = scalar_lea.vmem %s844_s3, %s692_s9  ;;  %s245_s23 = scalar_lea.vmem %s846_s5, %s681_s15 }
  0x10   : > { %252 = vst [vmem:[#allocation1 + $0x10] ss:$2 sm:$0xff] %v247_v0 }
  0x11   : > { %250 = vst [vmem:[#allocation1] ss:$2 sm:$0xff] %v769_v1 }
  0x17   : > { %v772_v2 = vld.sshfl [vmem:[#allocation1 + $0x10] sm:$0xff pattern:$0x75316420] }
  0x18   : > { %266 = vst [vmem:[#allocation1 + $0x11] ss:$2 sm:$0xff] %v247_v0  ;;  %v253_v3 = vld.sshfl [vmem:[#allocation1] sm:$0xff pattern:$0x75316420] }
  0x19   : > { %v254_v4 = vld.sshfl [vmem:[#allocation1 + $0x8] sm:$0xff pattern:$0x75316420]  ;;  %259 = vst [vmem:[#allocation2] sm:$0xf] %v253_v3 }
  0x1a   : > { %264 = vst [vmem:[#allocation1 + $0x1] ss:$2 sm:$0xff] %v769_v1 }
  0x1b   : > { %260 = vst [vmem:[#allocation2 + $0x8] sm:$0xf] %v254_v4 }
  0x1c   : > { %262 = vst.msk [vmem:[#allocation2 + $0x10] sm:$0xf] %vm261_vm0, %v772_v2 }
  0x1f   : > { %v269_v5 = vld.sshfl [vmem:[#allocation1 + $0x10] sm:$0xff pattern:$0x75316420] }
  0x20   : > { %274 = vrot.lane.b32.xlu1 %v269_v5, %s717_s24  ;;  %288 = vst [vmem:[#allocation1 + $0x10] ss:$2 sm:$0xff] %v247_v0 }
  0x21   : > { %v267_v6 = vld.sshfl [vmem:[#allocation1] sm:$0xff pattern:$0x75316420]  ;;  %v268_v7 = vld.sshfl [vmem:[#allocation1 + $0x8] sm:$0xff pattern:$0x75316420] }
  0x22   : > { %286 = vst [vmem:[#allocation1] ss:$2 sm:$0xff] %v769_v1 }
  0x27   : > { %v291_v8 = vld.sshfl [vmem:[#allocation1 + $0x10] sm:$0xff pattern:$0x75316420] }
  0x28   : > { %296 = vrot.lane.b32.xlu1 %v291_v8, %s718_s25  ;;  %310 = vst [vmem:[#allocation1 + $0x11] ss:$2 sm:$0xff] %v247_v0 }
  0x29   : > { %v289_v9 = vld.sshfl [vmem:[#allocation1] sm:$0xff pattern:$0x75316420]  ;;  %v290_v10 = vld.sshfl [vmem:[#allocation1 + $0x8] sm:$0xff pattern:$0x75316420] }
  0x2a   : > { %292 = vrot.lane.b32.xlu0 %v289_v9, %s718_s25  ;;  %308 = vst [vmem:[#allocation1 + $0x1] ss:$2 sm:$0xff] %v769_v1 }
  0x2f   : > { %v313_v11 = vld.sshfl [vmem:[#allocation1 + $0x10] sm:$0xff pattern:$0x75316420] }
  0x30   : > { %318 = vrot.lane.b32.xlu2 %v313_v11, %s719_s26  ;;  %331 = vst [vmem:[#allocation1 + $0x10] ss:$2 sm:$0xff] %v247_v0 }
  0x31   : > { %v311_v12 = vld.sshfl [vmem:[#allocation1] sm:$0xff pattern:$0x75316420]  ;;  %v312_v13 = vld.sshfl [vmem:[#allocation1 + $0x8] sm:$0xff pattern:$0x75316420] }
  0x32   : > { %329 = vst [vmem:[#allocation1] ss:$2 sm:$0xff] %v769_v1 }
  0x37   : > { %v334_v14 = vld.sshfl [vmem:[#allocation1 + $0x10] sm:$0xff pattern:$0x75316420] }
  0x38   : > { %339 = vrot.lane.b32.xlu1 %v334_v14, %s720_s27  ;;  %353 = vst [vmem:[#allocation1 + $0x11] ss:$2 sm:$0xff] %v247_v0 }
  0x39   : > { %v332_v15 = vld.sshfl [vmem:[#allocation1] sm:$0xff pattern:$0x75316420]  ;;  %v333_v16 = vld.sshfl [vmem:[#allocation1 + $0x8] sm:$0xff pattern:$0x75316420] }
  0x3a   : > { %335 = vrot.lane.b32.xlu2 %v332_v15, %s720_s27  ;;  %337 = vrot.lane.b32.xlu0 %v333_v16, %s720_s27  ;;  %351 = vst [vmem:[#allocation1 + $0x1] ss:$2 sm:$0xff] %v769_v1 }
  0x3f   : > { %v356_v17 = vld.sshfl [vmem:[#allocation1 + $0x10] sm:$0xff pattern:$0x75316420] }
  0x40   : > { %374 = vst [vmem:[#allocation1 + $0x10] ss:$2 sm:$0xff] %v247_v0 }
  0x41   : > { %v354_v18 = vld.sshfl [vmem:[#allocation1] sm:$0xff pattern:$0x75316420]  ;;  %v355_v19 = vld.sshfl [vmem:[#allocation1 + $0x8] sm:$0xff pattern:$0x75316420] }
  0x42   : > { %361 = vrot.lane.b32.xlu2 %v356_v17, %s721_s28  ;;  %357 = vrot.lane.b32.xlu1 %v354_v18, %s721_s28  ;;  %372 = vst [vmem:[#allocation1] ss:$2 sm:$0xff] %v769_v1 }
  0x47   : > { %v377_v20 = vld.sshfl [vmem:[#allocation1 + $0x10] sm:$0xff pattern:$0x75316420] }
  0x48   : > { %396 = vst [vmem:[#allocation1 + $0x11] ss:$2 sm:$0xff] %v247_v0  ;;  %382 = vrot.lane.b32.xlu0 %v377_v20, %s722_s29 }
  0x49   : > { %v376_v21 = vld.sshfl [vmem:[#allocation1 + $0x8] sm:$0xff pattern:$0x75316420]  ;;  %v375_v22 = vld.sshfl [vmem:[#allocation1] sm:$0xff pattern:$0x75316420] }
  0x4a   : > { %359 = vrot.lane.b32.xlu2 %v355_v19, %s721_s28  ;;  %380 = vrot.lane.b32.xlu1 %v376_v21, %s722_s29  ;;  %394 = vst [vmem:[#allocation1 + $0x1] ss:$2 sm:$0xff] %v769_v1  ;;  %v530_v21 = vld [vmem:[%s843_s2] sm:$0x7] }
  0x4f   : > { %v399_v23 = vld.sshfl [vmem:[#allocation1 + $0x10] sm:$0xff pattern:$0x75316420] }
  0x50   : > { %417 = vst [vmem:[#allocation1 + $0x10] ss:$2 sm:$0xff] %v247_v0  ;;  %378 = vrot.lane.b32.xlu0 %v375_v22, %s722_s29 }
  0x51   : > { %v398_v24 = vld.sshfl [vmem:[#allocation1 + $0x8] sm:$0xff pattern:$0x75316420]  ;;  %v397_v25 = vld.sshfl [vmem:[#allocation1] sm:$0xff pattern:$0x75316420] }
  0x52   : > { %314 = vrot.lane.b32.xlu2 %v311_v12, %s719_s26  ;;  %404 = vrot.lane.b32.xlu1 %v399_v23, %s723_s30  ;;  %415 = vst [vmem:[#allocation1] ss:$2 sm:$0xff] %v769_v1  ;;  %v534_v23 = vperm.slane %v530_v21, 2 }
  0x57   : > { %v420_v26 = vld.sshfl [vmem:[#allocation1 + $0x10] sm:$0xff pattern:$0x75316420] }
  0x58   : > { %402 = vrot.lane.b32.xlu0 %v398_v24, %s723_s30  ;;  %v532_v24 = vperm.slane %v530_v21, 0 }
  0x59   : > { %v418_v27 = vld.sshfl [vmem:[#allocation1] sm:$0xff pattern:$0x75316420]  ;;  %v419_v28 = vld.sshfl [vmem:[#allocation1 + $0x8] sm:$0xff pattern:$0x75316420] }
  0x5a   : > { %294 = vrot.lane.b32.xlu1 %v290_v10, %s718_s25  ;;  %400 = vrot.lane.b32.xlu2 %v397_v25, %s723_s30  ;;  %v533_v25 = vperm.slane %v530_v21, 1 }
  0x60   : > { %425 = vrot.lane.b32.xlu0 %v420_v26, %s724_s6 }
  0x62   : > { %421 = vrot.lane.b32.xlu2 %v418_v27, %s724_s6  ;;  %270 = vrot.lane.b32.xlu1 %v267_v6, %s717_s24  ;;  %v436_v6 = vld [vmem:[%s842_s1] sm:$0xff] }
  0x68   : > { %423 = vrot.lane.b32.xlu0 %v419_v28, %s724_s6 }
  0x6a   : > { %272 = vrot.lane.b32.xlu2 %v268_v7, %s717_s24 }
  0x70   : > { %316 = vrot.lane.b32.xlu0 %v312_v13, %s719_s26 }
  0x8a   : > { %v793_v29 = vpop.permute.xlu2 %318 }
  0x8b   : > { %328 = vst.msk [vmem:[#allocation2 + $0x28] sm:$0xf0] %vm284_vm1, %v793_v29 }
  0x92   : > { %v275_v30 = vpop.permute.xlu1 %274 }
  0x93   : > { %285 = vst.msk [vmem:[#allocation2 + $0x10] sm:$0xf0] %vm284_vm1, %v275_v30 }
  0x94   : > { %v336_v31 = vpop.permute.xlu2 %335 }
  0x9a   : > { %v297_v32 = vpop.permute.xlu1 %296  ;;  %v439_v8 = vld [vmem:[#allocation2 + $0x10] sm:$0xff] }
  0x9b   : > { %306 = vst.msk [vmem:[#allocation2 + $0x28] sm:$0xf] %vm261_vm0, %v297_v32 }
  0x9c   : > { %v362_v33 = vpop.permute.xlu2 %361  ;;  %v293_v34 = vpop.permute.xlu0 %292 }
  0x9d   : > { %371 = vst.msk [vmem:[#allocation2 + $0x40] sm:$0xf0] %vm284_vm1, %v362_v33 }
  0xa2   : > { %v442_v5 = vld [vmem:[#allocation2 + $0x28] sm:$0xff] }
  0xa4   : > { %v360_v35 = vpop.permute.xlu2 %359 }
  0xa5   : > { %v365_v36 = vsel %vm363_vm2, %v360_v35, %v362_v33 }
  0xa6   : > { %370 = vst [vmem:[#allocation2 + $0x38] sm:$0xf0] %v365_v36 }
  0xaa   : > { %v340_v37 = vpop.permute.xlu1 %339 }
  0xab   : > { %349 = vst.msk [vmem:[#allocation2 + $0x40] sm:$0xf] %vm261_vm0, %v340_v37 }
  0xac   : > { %v802_v38 = vpop.permute.xlu2 %314  ;;  %v338_v39 = vpop.permute.xlu0 %337 }
  0xad   : > { %v342_v40 = vsel %vm341_vm3, %v336_v31, %v338_v39  ;;  %v343_v41 = vsel %vm341_vm3, %v338_v39, %v340_v37 }
  0xae   : > { %347 = vst [vmem:[#allocation2 + $0x30] sm:$0xf] %v342_v40 }
  0xaf   : > { %348 = vst [vmem:[#allocation2 + $0x38] sm:$0xf] %v343_v41 }
  0xb2   : > { %v445_v4 = vld [vmem:[#allocation2 + $0x40] sm:$0xff] }
  0xb4   : > { %v358_v42 = vpop.permute.xlu1 %357  ;;  %v401_v43 = vpop.permute.xlu2 %400 }
  0xb5   : > { %v364_v44 = vsel %vm363_vm2, %v358_v42, %v360_v35 }
  0xb6   : > { %369 = vst [vmem:[#allocation2 + $0x30] sm:$0xf0] %v364_v44  ;;  %v444_v16 = vld [vmem:[#allocation2 + $0x38] sm:$0xff] }
  0xba   : > { %v383_v45 = vpop.permute.xlu0 %382 }
  0xbb   : > { %392 = vst.msk [vmem:[#allocation2 + $0x58] sm:$0xf] %vm261_vm0, %v383_v45 }
  0xbc   : > { %v381_v46 = vpop.permute.xlu1 %380  ;;  %v422_v47 = vpop.permute.xlu2 %421 }
  0xbd   : > { %v386_v48 = vsel %vm384_vm4, %v381_v46, %v383_v45  ;;  %v443_v15 = vld [vmem:[#allocation2 + $0x30] sm:$0xff] }
  0xbe   : > { %391 = vst [vmem:[#allocation2 + $0x50] sm:$0xf] %v386_v48 }
  0xc2   : > { %v379_v49 = vpop.permute.xlu0 %378 }
  0xc3   : > { %v385_v50 = vsel %vm384_vm4, %v379_v49, %v381_v46 }
  0xc4   : > { %v405_v51 = vpop.permute.xlu1 %404  ;;  %390 = vst [vmem:[#allocation2 + $0x48] sm:$0xf] %v385_v50  ;;  %v273_v52 = vpop.permute.xlu2 %272 }
  0xc5   : > { %414 = vst.msk [vmem:[#allocation2 + $0x58] sm:$0xf0] %vm284_vm1, %v405_v51  ;;  %v278_v53 = vsel %vm276_vm5, %v273_v52, %v275_v30 }
  0xc6   : > { %283 = vst [vmem:[#allocation2 + $0x8] sm:$0xf0] %v278_v53 }
  0xca   : > { %v403_v54 = vpop.permute.xlu0 %402 }
  0xcb   : > { %v407_v55 = vsel %vm406_vm6, %v401_v43, %v403_v54  ;;  %v408_v56 = vsel %vm406_vm6, %v403_v54, %v405_v51 }
  0xcc   : > { %v295_v57 = vpop.permute.xlu1 %294  ;;  %412 = vst [vmem:[#allocation2 + $0x48] sm:$0xf0] %v407_v55  ;;  %v448_v3 = vld [vmem:[#allocation2 + $0x58] sm:$0xff] }
  0xcd   : > { %v299_v58 = vsel %vm298_vm7, %v293_v34, %v295_v57  ;;  %v300_v59 = vsel %vm298_vm7, %v295_v57, %v297_v32  ;;  %413 = vst [vmem:[#allocation2 + $0x50] sm:$0xf0] %v408_v56  ;;  %v438_v20 = vld [vmem:[#allocation2 + $0x8] sm:$0xff] }
  0xce   : > { %304 = vst [vmem:[#allocation2 + $0x18] sm:$0xf] %v299_v58 }
  0xcf   : > { %305 = vst [vmem:[#allocation2 + $0x20] sm:$0xf] %v300_v59 }
  0xd2   : > { %v426_v60 = vpop.permute.xlu0 %425 }
  0xd3   : > { %435 = vst.msk [vmem:[#allocation2 + $0x70] sm:$0xf] %vm261_vm0, %v426_v60  ;;  %v446_v13 = vld [vmem:[#allocation2 + $0x48] sm:$0xff] }
  0xd4   : > { %v271_v61 = vpop.permute.xlu1 %270  ;;  %v447_v14 = vld [vmem:[#allocation2 + $0x50] sm:$0xff] }
  0xd5   : > { %v277_v62 = vsel %vm276_vm5, %v271_v61, %v273_v52 }
  0xd6   : > { %282 = vst [vmem:[#allocation2] sm:$0xf0] %v277_v62 }
  0xda   : > { %v424_v63 = vpop.permute.xlu0 %423  ;;  %v451_v0 = vld [vmem:[#allocation2 + $0x70] sm:$0xf] }
  0xdb   : > { %v428_v1 = vsel %vm427_vm8, %v422_v47, %v424_v63  ;;  %v429_v2 = vsel %vm427_vm8, %v424_v63, %v426_v60  ;;  %687 = vmatpush.msk.msra.mxu2 %vm456_vm9, %v451_v0 }
  0xdc   : > { %433 = vst [vmem:[#allocation2 + $0x60] sm:$0xf] %v428_v1 }
  0xdd   : > { %434 = vst [vmem:[#allocation2 + $0x68] sm:$0xf] %v429_v2  ;;  %518 = vmatpush.msra.mxu2 %v448_v3  ;;  %v437_v18 = vld [vmem:[#allocation2] sm:$0xff] }
  0xdf   : > { %519 = vmatpush.msra.mxu2 %v445_v4 }
  0xe1   : > { %520 = vmatpush.msra.mxu2 %v442_v5 }
  0xe2   : > { %v317_v7 = vpop.permute.xlu0 %316 }
  0xe3   : > { %v321_v9 = vsel %vm320_vm10, %v802_v38, %v317_v7  ;;  %v322_v10 = vsel %vm320_vm10, %v317_v7, %v793_v29  ;;  %521 = vmatpush.msra.mxu2 %v439_v8  ;;  %v449_v11 = vld [vmem:[#allocation2 + $0x60] sm:$0xf] }
  0xe4   : > { %326 = vst [vmem:[#allocation2 + $0x18] sm:$0xf0] %v321_v9  ;;  %683 = vmatpush.msk.msra.mxu0 %vm456_vm9, %v449_v11  ;;  %v450_v12 = vld [vmem:[#allocation2 + $0x68] sm:$0xf]  ;;  %688 = vmatmul.msk.f32.vlgmr.msra.gmra.mxu2 %vm452_vm11, %v436_v6 }
  0xe5   : > { %327 = vst [vmem:[#allocation2 + $0x20] sm:$0xf0] %v322_v10  ;;  %685 = vmatpush.msk.msra.mxu1 %vm456_vm9, %v450_v12 }
  0xe6   : > { %478 = vmatpush.msra.mxu0 %v446_v13 }
  0xe7   : > { %498 = vmatpush.msra.mxu1 %v447_v14 }
  0xe8   : > { %479 = vmatpush.msra.mxu0 %v443_v15 }
  0xe9   : > { %499 = vmatpush.msra.mxu1 %v444_v16 }
  0xeb   : > { %v440_v17 = vld [vmem:[#allocation2 + $0x18] sm:$0xff] }
  0xec   : > { %480 = vmatpush.msra.mxu0 %v440_v17  ;;  %v441_v19 = vld [vmem:[#allocation2 + $0x20] sm:$0xff] }
  0xed   : > { %500 = vmatpush.msra.mxu1 %v441_v19 }
  0xee   : > { %481 = vmatpush.msra.mxu0 %v437_v18 }
  0xef   : > { %501 = vmatpush.msra.mxu1 %v438_v20  ;;  %684 = vmatmul.msk.f32.vlgmr.msra.gmra.mxu0 %vm452_vm11, %v436_v6 }
  0xf0   : > { %686 = vmatmul.msk.f32.vlgmr.msra.gmra.mxu1 %vm452_vm11, %v436_v6 }
 0x167   : > { %v523_v22 = vpop.f32.mrf.mxu2 }
 0x168   : > { %529 = vst.msk [vmem:[%s237_s14 + $0x10] sm:$0xff] %vm528_vm12, %v523_v22  ;;  %v540_v26 = vmul.f32 %v534_v23, %v523_v22 }
 0x16a   : > { %v550_v31 = vmul.f32 %v540_v26, %v523_v22  ;;  %v542_v33 = vsel %vm528_vm12, %v540_v26, 0.0 }
 0x16c   : > { %v483_v27 = vpop.f32.mrf.mxu0  ;;  %v552_v38 = vsel %vm528_vm12, %v550_v31, 0.0 }
 0x16d   : > { %526 = vst [vmem:[%s237_s14] sm:$0xff] %v483_v27  ;;  %v538_v28 = vmul.f32 %v532_v24, %v483_v27  ;;  %v503_v29 = vpop.f32.mrf.mxu1 }
 0x16e   : > { %527 = vst [vmem:[%s237_s14 + $0x8] sm:$0xff] %v503_v29  ;;  %v539_v30 = vmul.f32 %v533_v25, %v503_v29 }
 0x16f   : > { %v548_v32 = vmul.f32 %v538_v28, %v483_v27 }
 0x170   : > { %v549_v34 = vmul.f32 %v539_v30, %v503_v29  ;;  %v541_v35 = vadd.f32 %v539_v30, %v538_v28 }
 0x172   : > { %v543_v36 = vadd.f32 %v542_v33, %v541_v35  ;;  %v551_v37 = vadd.f32 %v549_v34, %v548_v32 }
 0x174   : > { %544 = vadd.xlane.f32.xlu0 %v543_v36  ;;  %v553_v39 = vadd.f32 %v552_v38, %v551_v37 }
 0x176   : > { %554 = vadd.xlane.f32.xlu1 %v553_v39 }
 0x1e7   : > { %v545_v40 = vpop.xlane.xlu0 %544 }
 0x1e8   : > { %547 = vst.msk [vmem:[%s241_s20] sm:$0xff] %vm546_vm13, %v545_v40 }
 0x1e9   : > { %v555_v41 = vpop.xlane.xlu1 %554 }
 0x1ea   : > { %556 = vst.msk [vmem:[%s245_s23] sm:$0xff] %vm546_vm13, %v555_v41 }
 0x1eb PF: > { %s16_s18 = sadd.s32 1, %s715_s18  }
 0x1ec   : > { %p13_p4 = scmp.ge.s32.totalorder %s16_s18, 4  }
 0x1ee   :  { %15 = sbr.rel (!%p13_p4) target bundleno = 1 (0x1), region = 99 }

// kernel: cbr_forward.3
= control target key start
LH: loop header
LB: loop body
LE: loop exit
PB: predicated region body
PF: predicated region fallthrough
CT: control target
= control target key end

     0   :  { %9 = vsyncpa [#allocation3], 0  ;;  %s970_s0 = inlined_call_operand.vmem [shape: f32[2,8,16,18], index: 0, kind: input, shape index: {}]   ;;  %s971_s1 = inlined_call_operand.vmem [shape: f32[8,1,16], index: 1, kind: input, shape index: {}]   ;;  %s972_s2 = inlined_call_operand.vmem [shape: f32[8,1,16], index: 2, kind: input, shape index: {}]   ;;  %s973_s3 = inlined_call_operand.vmem [shape: f32[8,1,16], index: 3, kind: input, shape index: {}]   ;;  %s974_s4 = inlined_call_operand.hbm [shape: f32[2,8,16,16], index: 4, kind: output, shape index: {}]  }
   0x1   :  { %11 = vsyncpa [#allocation3 + $0x1], 0  ;;  %s736_s15 = smov 0   ;;  %s738_s16 = smov 0  }
   0x2   :  { %s740_s17 = smov 0   ;;  %s742_s18 = smov 0  }
   0x3   :  { %s744_s19 = smov 0   ;;  %s746_s20 = smov 0  }
   0x4 LB: > { %s533_s21 = sadd.s32 4294967295, %s707_s20   ;;  %s534_s22 = sadd.s32 4294967294, %s707_s20   ;;  %s707_s20 = sphi %s746_s20, %s17_s20   ;;  %s703_s19 = sphi %s744_s19, %s981_s19   ;;  %s699_s18 = sphi %s742_s18, %s980_s18   ;;  %s695_s17 = sphi %s740_s17, %s979_s17   ;;  %s691_s16 = sphi %s738_s16, %s978_s16   ;;  %s687_s15 = sphi %s736_s15, %s977_s15  }
   0x5   : > { %s29_s23 = sadd.s32 1, %s703_s19  ;;  %s129_s24 = sadd.s32 1, %s695_s17 }
   0x6   : > { %p31_p0 = scmp.ge.s32.totalorder %s29_s23, 2  ;;  %p139_p1 = scmp.ne.s32.totalorder %s695_s17, %s691_s16 }
   0x7   : > { %p140_p2 = scmp.eq.s32.totalorder %s533_s21, 1  ;;  %p145_p3 = scmp.ne.s32.totalorder %s691_s16, %s687_s15 }
   0x8   : > { %s983_s23 = smov (%p31_p0, %s29_s23), 0  ;;  %p146_p5 = scmp.eq.s32.totalorder %s534_s22, 1 }
   0x9   : > { %p776_p4 = por %p140_p2, %p139_p1  ;;  %s124_s26 = ssub.s32 %s703_s19, %s983_s23 }
   0xa   : > { %p537_p6 = scmp.ge.s32.totalorder %s707_s20, 1  ;;  %p127_p7 = scmp.eq.s32.totalorder %s124_s26, 0 }
   0xb   : > { %p783_p8 = por %p146_p5, %p145_p3  ;;  %p186_p9 = scmp.lt.s32.totalorder %s707_s20, 3 }
   0xc   : > { %s789_s28 = scalar_select %p127_p7, %s695_s17, %s129_s24  }
   0xd   : > { %p187_p10 = pnand %p537_p6, %p186_p9 }
   0xe   : > { %p217_p11 = scmp.lt.s32.totalorder (!%p187_p10), %s699_s18, 1  ;;  %s213_s29 = sand.u32 (!%p187_p10), 1, %s691_s16  }
   0xf   : > { %190 = sbr.rel (%p187_p10) target bundleno = 52 (0x34), region = 36  ;;  %s805_s11 = sshll.u32 (!%p187_p10), %s213_s29, 7 }
  0x10   : > { %s547_s14 = sshll.u32 (!%p187_p10), %s699_s18, 7  ;;  %s437_s9 = scalar_lea.sflag (!%p187_p10), [#allocation3], %s213_s29 }
  0x11   : > { %s913_s7 = scalar_lea.hbm (!%p187_p10), %s974_s4, %s547_s14  ;;  %s649_s22 = scalar_lea.hbm (!%p187_p10), %s974_s4, 256 }
  0x12   : > { %s453_s14 = sshll.u32 (!%p187_p10), %s913_s7, 4  ;;  %s454_s14 = int_to_ptr.hbm [resolvable:$true] %s453_s14 }
  0x13   : > { %s643_s10 = sshra.s32 (!%p187_p10), %s454_s14, 4  ;;  %s644_s10 = int_to_ptr.hbm [resolvable:$true] %s643_s10 }
  0x14   : > { %s218_s30 = scalar_select %p217_p11, %s699_s18, 1  ;;  %v605_v0 = vld [vmem:[%s971_s1] ss:$0 sm:$0xff]  ;;  %v608_v2 = vld [vmem:[%s971_s1 + $0x1] ss:$0 sm:$0xff]  ;;  %vm419_vm0 = vcmask 130048  }
  0x15   : > { %v606_v1 = vld [vmem:[%s972_s2] ss:$0 sm:$0xff]  ;;  %v609_v3 = vld [vmem:[%s972_s2 + $0x1] ss:$0 sm:$0xff]  ;;  %v611_v5 = vld [vmem:[%s971_s1 + $0x2] ss:$0 sm:$0xff]  ;;  %p650_p1 = scmp.lt.s32.totalorder %s644_s10, %s974_s4 }
  0x16   : > { %s546_s12 = sshll.u32 %s218_s30, 7  ;;  %v607_v4 = vld [vmem:[%s973_s3] ss:$0 sm:$0xff]  ;;  %v612_v6 = vld [vmem:[%s972_s2 + $0x2] ss:$0 sm:$0xff]  ;;  %s645_s13 = scalar_lea.hbm %s644_s10, 128 }
  0x17   : > { %s813_s24 = scalar_lea.vmem %s970_s0, %s546_s12  ;;  %v610_v15 = vld [vmem:[%s973_s3 + $0x1] ss:$0 sm:$0xff]  ;;  %v613_v18 = vld [vmem:[%s973_s3 + $0x2] ss:$0 sm:$0xff]  ;;  %v614_v27 = vld [vmem:[%s971_s1 + $0x3] ss:$0 sm:$0xff]  ;;  %p646_p12 = scmp.ne.s32.totalorder %s644_s10, %s645_s13 }
  0x18   : > { %v227_v7 = vld [vmem:[%s813_s24] sm:$0xff]  ;;  %v228_v8 = vld [vmem:[%s813_s24 + $0x8] sm:$0xff]  ;;  %v229_v9 = vld [vmem:[%s813_s24 + $0x10] sm:$0xff]  ;;  %s857_s12 = scalar_lea.vmem [#allocation2], %s805_s11  ;;  %p651_p2 = scmp.lt.s32.totalorder %s649_s22, %s645_s13 }
  0x19   : > { %v275_v10 = vmul.f32 %v605_v0, %v227_v7  ;;  %v276_v11 = vmul.f32 %v605_v0, %v228_v8  ;;  %v277_v12 = vmul.f32 %v608_v2, %v229_v9  ;;  %v230_v13 = vld [vmem:[%s813_s24 + $0x18] sm:$0xff]  ;;  %v231_v14 = vld [vmem:[%s813_s24 + $0x20] sm:$0xff]  ;;  %v232_v19 = vld [vmem:[%s813_s24 + $0x28] sm:$0xff]  ;;  %s451_s18 = sshll.u32 %s857_s12, 4  ;;  %p647_p13 = pnand %p646_p12, %p776_p4  ;;  %s452_s18 = int_to_ptr.vmem [resolvable:$true] %s451_s18 }
  0x1a   : > { %v278_v16 = vmul.f32 %v608_v2, %v230_v13  ;;  %v279_v17 = vmul.f32 %v611_v5, %v231_v14  ;;  %v233_v23 = vld [vmem:[%s813_s24 + $0x30] sm:$0xff]  ;;  %v280_v26 = vmul.f32 %v611_v5, %v232_v19  ;;  %v615_v28 = vld [vmem:[%s972_s2 + $0x3] ss:$0 sm:$0xff]  ;;  %v234_v31 = vld [vmem:[%s813_s24 + $0x38] sm:$0xff]  ;;  %p652_p3 = por %p651_p2, %p650_p1 }
  0x1b   : > { %v323_v20 = vadd.f32 %v606_v1, %v275_v10  ;;  %v324_v21 = vadd.f32 %v606_v1, %v276_v11  ;;  %v325_v22 = vadd.f32 %v609_v3, %v277_v12  ;;  %v235_v32 = vld [vmem:[%s813_s24 + $0x40] sm:$0xff]  ;;  %v236_v41 = vld [vmem:[%s813_s24 + $0x48] sm:$0xff]  ;;  %v281_v45 = vmul.f32 %v614_v27, %v233_v23  ;;  %v237_v47 = vld [vmem:[%s813_s24 + $0x50] sm:$0xff]  ;;  %p648_p0 = pneg %p647_p13 }
  0x1c   : > { %v326_v24 = vadd.f32 %v609_v3, %v278_v16  ;;  %v327_v25 = vadd.f32 %v612_v6, %v279_v17  ;;  %v616_v35 = vld [vmem:[%s973_s3 + $0x3] ss:$0 sm:$0xff]  ;;  %v617_v36 = vld [vmem:[%s971_s1 + $0x4] ss:$0 sm:$0xff]  ;;  %v328_v44 = vadd.f32 %v612_v6, %v280_v26  ;;  %v282_v49 = vmul.f32 %v614_v27, %v234_v31  ;;  %v620_v52 = vld [vmem:[%s971_s1 + $0x5] ss:$0 sm:$0xff] }
  0x1d   : > { %vm339_vm1 = vcmp.ge.f32.partialorder %v323_v20, 0.0  ;;  %v387_v29 = vmul.f32 %v607_v4, %v323_v20  ;;  %vm340_vm2 = vcmp.ge.f32.partialorder %v324_v21, 0.0  ;;  %v388_v30 = vmul.f32 %v607_v4, %v324_v21  ;;  %v618_v40 = vld [vmem:[%s972_s2 + $0x4] ss:$0 sm:$0xff]  ;;  %v238_v53 = vld [vmem:[%s813_s24 + $0x58] sm:$0xff]  ;;  %v240_v6 = vld [vmem:[%s813_s24 + $0x68] sm:$0xff]  ;;  %p653_p5 = pnand %p652_p3, %p648_p0 }
  0x1e   : > { %vm341_vm3 = vcmp.ge.f32.partialorder %v325_v22, 0.0  ;;  %v389_v33 = vmul.f32 %v610_v15, %v325_v22  ;;  %vm342_vm4 = vcmp.ge.f32.partialorder %v326_v24, 0.0  ;;  %v390_v34 = vmul.f32 %v610_v15, %v326_v24  ;;  %v619_v46 = vld [vmem:[%s973_s3 + $0x4] ss:$0 sm:$0xff]  ;;  %v621_v56 = vld [vmem:[%s972_s2 + $0x5] ss:$0 sm:$0xff] }
  0x1f   : > { %v403_v37 = vsel %vm339_vm1, %v323_v20, %v387_v29  ;;  %v404_v38 = vsel %vm340_vm2, %v324_v21, %v388_v30  ;;  %vm343_vm5 = vcmp.ge.f32.partialorder %v327_v25, 0.0  ;;  %v391_v39 = vmul.f32 %v613_v18, %v327_v25  ;;  %v622_v61 = vld [vmem:[%s973_s3 + $0x5] ss:$0 sm:$0xff]  ;;  %v623_v2 = vld [vmem:[%s971_s1 + $0x6] ss:$0 sm:$0xff]  ;;  %v241_v11 = vld [vmem:[%s813_s24 + $0x70] sm:$0xff] }
  0x20   : > { %420 = vst.msk [vmem:[%s857_s12] sm:$0xff] %vm419_vm0, %v403_v37  ;;  %v405_v42 = vsel %vm341_vm3, %v325_v22, %v389_v33  ;;  %v406_v43 = vsel %vm342_vm4, %v326_v24, %v390_v34  ;;  %v283_v50 = vmul.f32 %v617_v36, %v235_v32  ;;  %v284_v51 = vmul.f32 %v617_v36, %v236_v41  ;;  %v239_v62 = vld [vmem:[%s813_s24 + $0x60] sm:$0xff]  ;;  %v242_v17 = vld [vmem:[%s813_s24 + $0x78] sm:$0xff] }
  0x21   : > { %421 = vst.msk [vmem:[%s857_s12 + $0x8] sm:$0xff] %vm419_vm0, %v404_v38  ;;  %v407_v48 = vsel %vm343_vm5, %v327_v25, %v391_v39  ;;  %vm344_vm6 = vcmp.ge.f32.partialorder %v328_v44, 0.0  ;;  %v392_v54 = vmul.f32 %v613_v18, %v328_v44  ;;  %v329_v55 = vadd.f32 %v615_v28, %v281_v45  ;;  %v624_v5 = vld [vmem:[%s972_s2 + $0x6] ss:$0 sm:$0xff]  ;;  %v626_v16 = vld [vmem:[%s971_s1 + $0x7] ss:$0 sm:$0xff] }
  0x22   : > { %422 = vst.msk [vmem:[%s857_s12 + $0x10] sm:$0xff] %vm419_vm0, %v405_v42  ;;  %v330_v57 = vadd.f32 %v615_v28, %v282_v49  ;;  %v331_v58 = vadd.f32 %v618_v40, %v283_v50  ;;  %v332_v59 = vadd.f32 %v618_v40, %v284_v51  ;;  %v285_v60 = vmul.f32 %v620_v52, %v237_v47  ;;  %v625_v10 = vld [vmem:[%s973_s3 + $0x6] ss:$0 sm:$0xff]  ;;  %v627_v21 = vld [vmem:[%s972_s2 + $0x7] ss:$0 sm:$0xff] }
  0x23   : > { %423 = vst.msk [vmem:[%s857_s12 + $0x18] sm:$0xff] %vm419_vm0, %v406_v43  ;;  %v408_v63 = vsel %vm344_vm6, %v328_v44, %v392_v54  ;;  %vm345_vm7 = vcmp.ge.f32.partialorder %v329_v55, 0.0  ;;  %v393_v0 = vmul.f32 %v616_v35, %v329_v55  ;;  %v286_v1 = vmul.f32 %v620_v52, %v238_v53  ;;  %v628_v25 = vld [vmem:[%s973_s3 + $0x7] ss:$0 sm:$0xff] }
  0x24   : > { %424 = vst.msk [vmem:[%s857_s12 + $0x20] sm:$0xff] %vm419_vm0, %v407_v48  ;;  %vm346_vm8 = vcmp.ge.f32.partialorder %v330_v57, 0.0  ;;  %v394_v3 = vmul.f32 %v616_v35, %v330_v57  ;;  %vm347_vm9 = vcmp.ge.f32.partialorder %v331_v58, 0.0  ;;  %v395_v4 = vmul.f32 %v619_v46, %v331_v58 }
  0x25   : > { %425 = vst.msk [vmem:[%s857_s12 + $0x28] sm:$0xff] %vm419_vm0, %v408_v63  ;;  %v409_v7 = vsel %vm345_vm7, %v329_v55, %v393_v0  ;;  %vm348_vm10 = vcmp.ge.f32.partialorder %v332_v59, 0.0  ;;  %v396_v8 = vmul.f32 %v619_v46, %v332_v59  ;;  %v333_v9 = vadd.f32 %v621_v56, %v285_v60 }
  0x26   : > { %426 = vst.msk [vmem:[%s857_s12 + $0x30] sm:$0xff] %vm419_vm0, %v409_v7  ;;  %v410_v12 = vsel %vm346_vm8, %v330_v57, %v394_v3  ;;  %v411_v13 = vsel %vm347_vm9, %v331_v58, %v395_v4  ;;  %v334_v14 = vadd.f32 %v621_v56, %v286_v1  ;;  %v287_v15 = vmul.f32 %v623_v2, %v239_v62 }
  0x27   : > { %427 = vst.msk [vmem:[%s857_s12 + $0x38] sm:$0xff] %vm419_vm0, %v410_v12  ;;  %v412_v18 = vsel %vm348_vm10, %v332_v59, %v396_v8  ;;  %vm349_vm11 = vcmp.ge.f32.partialorder %v333_v9, 0.0  ;;  %v397_v19 = vmul.f32 %v622_v61, %v333_v9  ;;  %v288_v20 = vmul.f32 %v623_v2, %v240_v6 }
  0x28   : > { %428 = vst.msk [vmem:[%s857_s12 + $0x40] sm:$0xff] %vm419_vm0, %v411_v13  ;;  %vm350_vm12 = vcmp.ge.f32.partialorder %v334_v14, 0.0  ;;  %v398_v22 = vmul.f32 %v622_v61, %v334_v14  ;;  %v335_v23 = vadd.f32 %v624_v5, %v287_v15  ;;  %v289_v24 = vmul.f32 %v626_v16, %v241_v11 }
  0x29   : > { %429 = vst.msk [vmem:[%s857_s12 + $0x48] sm:$0xff] %vm419_vm0, %v412_v18  ;;  %v413_v26 = vsel %vm349_vm11, %v333_v9, %v397_v19  ;;  %v336_v27 = vadd.f32 %v624_v5, %v288_v20  ;;  %v290_v28 = vmul.f32 %v626_v16, %v242_v17 }
  0x2a   : > { %430 = vst.msk [vmem:[%s857_s12 + $0x50] sm:$0xff] %vm419_vm0, %v413_v26  ;;  %v414_v29 = vsel %vm350_vm12, %v334_v14, %v398_v22  ;;  %vm351_vm13 = vcmp.ge.f32.partialorder %v335_v23, 0.0  ;;  %v399_v30 = vmul.f32 %v625_v10, %v335_v23  ;;  %v337_v31 = vadd.f32 %v627_v21, %v289_v24 }
  0x2b   : > { %431 = vst.msk [vmem:[%s857_s12 + $0x58] sm:$0xff] %vm419_vm0, %v414_v29  ;;  %vm352_vm14 = vcmp.ge.f32.partialorder %v336_v27, 0.0  ;;  %v400_v32 = vmul.f32 %v625_v10, %v336_v27  ;;  %v338_v33 = vadd.f32 %v627_v21, %v290_v28 }
  0x2c   : > { %v415_v34 = vsel %vm351_vm13, %v335_v23, %v399_v30  ;;  %vm353_vm15 = vcmp.ge.f32.partialorder %v337_v31, 0.0  ;;  %v401_v35 = vmul.f32 %v628_v25, %v337_v31 }
  0x2d   : > { %432 = vst.msk [vmem:[%s857_s12 + $0x60] sm:$0xff] %vm419_vm0, %v415_v34  ;;  %v416_v36 = vsel %vm352_vm14, %v336_v27, %v400_v32  ;;  %vm354_vm1 = vcmp.ge.f32.partialorder %v338_v33, 0.0  ;;  %v402_v37 = vmul.f32 %v628_v25, %v338_v33 }
  0x2e   : > { %433 = vst.msk [vmem:[%s857_s12 + $0x68] sm:$0xff] %vm419_vm0, %v416_v36  ;;  %v417_v38 = vsel %vm353_vm15, %v337_v31, %v401_v35 }
  0x2f   : > { %434 = vst.msk [vmem:[%s857_s12 + $0x70] sm:$0xff] %vm419_vm0, %v417_v38  ;;  %v418_v39 = vsel %vm354_vm1, %v338_v33, %v402_v37 }
  0x30   : > { %435 = vst.msk [vmem:[%s857_s12 + $0x78] sm:$0xff] %vm419_vm0, %v418_v39 }
  0x31   : > { %656 = shalt.err (!%p653_p5)
}
  0x32   : > { %s709_s29 = smov 128   ;;  %s710_s12 = smov 8  }
  0x33   : > { %548 = dma.vmem_to_hbm [thread:$0]  (%p776_p4), %s452_s18, 2048, %s454_s14, %s437_s9, %s709_s29, %s709_s29, %s710_s12  }
  0x34 PF: > { %p554_p6 = scmp.ge.s32.totalorder %s707_s20, 2  ;;  %s468_s6 = sand.u32 1, %s687_s15  }
  0x35   : > { %s469_s30 = scalar_lea.sflag [#allocation3], %s468_s6 }
  0x36   : > { %p551_p7 = pnand %p554_p6, %p783_p8 }
  0x38   : > { %p552_p9 = pneg %p551_p7 }
  0x3a   : > { %682 = dma.done.wait (%p552_p9), %s469_s30, 2048  }
  0x3b   : > { %684 = vsyncadd (%p552_p9), %s469_s30, 4294965248  ;;  %s17_s20 = sadd.s32 1, %s707_s20   ;;  %s977_s15 = smov %s691_s16 }
  0x3c   : > { %p14_p10 = scmp.ge.s32.totalorder %s17_s20, 4   ;;  %s978_s16 = smov %s695_s17 }
  0x3d   : > { %s979_s17 = smov %s789_s28  ;;  %s980_s18 = smov %s703_s19 }
  0x3e   : > { %s981_s19 = smov %s983_s23  ;;  %16 = sbr.rel (!%p14_p10) target bundleno = 4 (0x4), region = 71 }
  0x43   :  { %475 = vsyncpa [#allocation3], 1 }
  0x44   :  { %477 = vsyncpa [#allocation3 + $0x1], 1 }

</bundles_post_ra>
